<compile_context>
chip_gen: v5e
topology: v5e:2x2
jax: 0.10.0
libtpu: 0.0.40
codegen_flags: <defaults>
</compile_context>

<pallas_src>
import math
import jax
import jax.numpy as jnp
from jax.experimental import pallas as pl
from jax.experimental.pallas import tpu as pltpu


def _make_positional_encoding(max_seq_length: int, d_model: int,
                              dtype=jnp.float32) -> jnp.ndarray:
    """Deterministic sin/cos positional-encoding table, shape (max_seq_length, d_model).

    Build it once at init in the *model* dtype so the forward path never pays a
    per-call cast (review item: hoist pe slice+cast out of the hot path).
    """
    assert d_model % 2 == 0, "d_model must be even (interleaved sin/cos)"
    position = jnp.arange(max_seq_length, dtype=jnp.float32)[:, None]            # (L, 1)
    div_term = jnp.exp(
        jnp.arange(0, d_model, 2, dtype=jnp.float32) * (-math.log(10000.0) / d_model)
    )                                                                             # (d_model/2,)
    angles = position * div_term                                                  # (L, d_model/2)
    pe = jnp.zeros((max_seq_length, d_model), dtype=jnp.float32)
    pe = pe.at[:, 0::2].set(jnp.sin(angles))
    pe = pe.at[:, 1::2].set(jnp.cos(angles))
    return pe.astype(dtype)


def _pos_enc_kernel(x_ref, pe_ref, o_ref):
    # x_ref:  (TILE_B, TILE_F)   flattened activations for a few batch rows
    # pe_ref: (1,      TILE_F)   shared pe slice (sublane-broadcast in the add)
    # o_ref:  (TILE_B, TILE_F)
    o_ref[...] = x_ref[...] + pe_ref[...]
    # TODO(synk): nn.Dropout(p=0.2) is identity in eval mode; training-mode inverted
    # dropout (pltpu.prng_seed + pltpu.prng_random_bits mask + 1/(1-p) scale) omitted.


def _ceil_div(a: int, b: int) -> int:
    return -(-a // b)


def _round_up(a: int, b: int) -> int:
    return _ceil_div(a, b) * b


def positional_encoding_forward(x: jnp.ndarray, pe_full: jnp.ndarray,
                                *, donate_x: bool = False) -> jnp.ndarray:
    """Add sin/cos positional encoding to x.

    Args:
      x:        (batch, seq_len, d_model) activations (f32 or bf16)
      pe_full:  (max_seq_length, d_model) precomputed table, ideally already in x.dtype
      donate_x: alias x's HBM buffer to the output (only if caller no longer needs x)
    Returns:
      (batch, seq_len, d_model), same dtype as x
    """
    batch, seq_len, d_model = x.shape
    assert pe_full.shape[0] >= seq_len and pe_full.shape[1] == d_model

    # Slice only when needed; cast only if the caller kept an f32 table for a
    # non-f32 model (store pe in model dtype at init to avoid both).
    pe = pe_full if pe_full.shape[0] == seq_len else pe_full[:seq_len, :]
    if pe.dtype != x.dtype:
        pe = pe.astype(x.dtype)

    # Flatten (seq, d_model) -> F so the Pallas output slab is lane-dense even for
    # small / non-multiple-of-128 d_model.  Contiguous-trailing-dim reshape: no copy.
    flat = seq_len * d_model
    x2 = x.reshape(batch, flat)
    pe2 = pe.reshape(1, flat)

    itemsize = jnp.dtype(x.dtype).itemsize

    # Native sublane pack for this dtype: 8 (f32), 16 (bf16/f16), 32 (int8/fp8).
    sub = max(8, 32 // itemsize)

    # dtype-aware sublane tile over batch (full batch if small, else one packed tile).
    tile_b = batch if batch <= sub else sub

    # ---- Sublane-PADDED VMEM accounting (what the hardware actually allocates) ----
    pad_b = _round_up(tile_b, sub)      # x / out blocks pad to a full sublane tile
    pe_rows = sub                       # the (1, tile_f) pe block pads to sub rows

    # tile_f: ~4 MiB of padded x per block AND total double-buffered padded footprint
    # (x + out + pe, x2 buffering) <= ~28 MiB; multiple of 128 lanes.
    x_block_cap_bytes = 4 << 20
    total_cap_bytes = 28 << 20
    cap_from_block = x_block_cap_bytes // (pad_b * itemsize)
    cap_from_total = total_cap_bytes // (2 * (2 * pad_b + pe_rows) * itemsize)
    cap = max(128, min(cap_from_block, cap_from_total))

    if flat <= cap:
        tile_f = flat                                   # full extent: always legal
    else:
        cap128 = max(128, (cap // 128) * 128)
        tile_f = cap128
        if flat % 128 == 0:
            # Prefer a divisor of flat (no ragged trailing tile -> no masked stores),
            # but only if it isn't much smaller than the cap.
            f_units = flat // 128
            for t in range(cap128 // 128, 0, -1):
                if f_units % t == 0:
                    if 2 * t * 128 >= cap128:
                        tile_f = t * 128
                    break

    num_f = _ceil_div(flat, tile_f)
    num_b = _ceil_div(batch, tile_b)

    # v7x megacore balance: with few steps, nudge an odd total step count to even by
    # halving tile_f (keeps the 128-lane multiple), so neither TensorCore idles.
    total_steps = num_f * num_b
    if 1 < total_steps < 16 and total_steps % 2 == 1 and tile_f % 256 == 0:
        tile_f //= 2
        num_f = _ceil_div(flat, tile_f)

    # Explicit scoped-VMEM limit sized from the real padded, double-buffered footprint
    # (+ headroom), clamped well inside v7x's 64 MiB physical VMEM.
    footprint = 2 * (2 * pad_b + pe_rows) * tile_f * itemsize
    vmem_limit = int(min(max(footprint + (8 << 20), 32 << 20), 48 << 20))

    grid = (num_f, num_b)  # F tiles OUTER, batch INNER -> pe fetched once per F tile

    out2 = pl.pallas_call(
        _pos_enc_kernel,
        out_shape=jax.ShapeDtypeStruct((batch, flat), x.dtype),
        grid_spec=pltpu.PrefetchScalarGridSpec(
            num_scalar_prefetch=0,
            grid=grid,
            in_specs=[
                # x: a (tile_b, tile_f) slab per grid step
                pl.BlockSpec((tile_b, tile_f), lambda f, b: (b, f)),
                # pe: invariant across the inner (batch) axis -> one DMA per F tile
                pl.BlockSpec((1, tile_f), lambda f, b: (0, f)),
            ],
            out_specs=pl.BlockSpec((tile_b, tile_f), lambda f, b: (b, f)),
        ),
        compiler_params=pltpu.CompilerParams(
            dimension_semantics=("parallel", "parallel"),
            vmem_limit_bytes=vmem_limit,
        ),
        input_output_aliases=({0: 0} if donate_x else {}),
    )(x2, pe2)

    return out2.reshape(batch, seq_len, d_model)


if __name__ == "__main__":
    # Small config consistent with the module's forward: (batch, seq_len, d_model)
    batch = 2
    seq_len = 8
    d_model = 32
    max_seq_length = 128

    key = jax.random.PRNGKey(0)
    x = jax.random.normal(key, (batch, seq_len, d_model), dtype=jnp.float32)

    # Table built once at init, already in the model dtype (no per-call cast).
    pe_full = _make_positional_encoding(max_seq_length, d_model, dtype=x.dtype)

    out = positional_encoding_forward(x, pe_full)
    out = jax.block_until_ready(out)

    # sanity check against pure-JAX reference
    ref = x + pe_full[None, :seq_len, :]
    assert out.shape == (batch, seq_len, d_model)
    assert jnp.allclose(out, ref, atol=1e-6), "mismatch vs reference"

    print("KERNEL_OK")
</pallas_src>

<mosaic_0001>
module attributes {stable_mosaic.version = 11 : i64} {
  func.func @_pos_enc_kernel(%arg0: i32, %arg1: i32, %arg2: memref<2x256xf32, #tpu.memory_space<vmem>>, %arg3: memref<1x256xf32, #tpu.memory_space<vmem>>, %arg4: memref<2x256xf32, #tpu.memory_space<vmem>>) attributes {dimension_semantics = [#tpu.dimension_semantics<parallel>, #tpu.dimension_semantics<parallel>], iteration_bounds = array<i64: 1, 1>, scalar_prefetch = 0 : i64, scratch_operands = 0 : i64, tpu.core_type = #tpu.core_type<tc>, window_params = [{transform_indices = @transform_0, window_bounds = array<i64: 2, 256>}, {transform_indices = @transform_1, window_bounds = array<i64: 1, 256>}, {transform_indices = @transform_2, window_bounds = array<i64: 2, 256>}]} {
    %c0 = arith.constant 0 : index
    %c0_0 = arith.constant 0 : index
    %0 = vector.load %arg2[%c0, %c0_0] : memref<2x256xf32, #tpu.memory_space<vmem>>, vector<2x256xf32>
    %c0_1 = arith.constant 0 : index
    %c0_2 = arith.constant 0 : index
    %1 = vector.load %arg3[%c0_1, %c0_2] : memref<1x256xf32, #tpu.memory_space<vmem>>, vector<1x256xf32>
    %2 = vector.broadcast %1 : vector<1x256xf32> to vector<2x256xf32>
    %3 = arith.addf %0, %2 : vector<2x256xf32>
    %c0_3 = arith.constant 0 : index
    %c0_4 = arith.constant 0 : index
    %4 = vector.load %arg4[%c0_3, %c0_4] : memref<2x256xf32, #tpu.memory_space<vmem>>, vector<2x256xf32>
    tpu.vector_store %arg4[%c0_3, %c0_4], %3 {strides = array<i32>} : memref<2x256xf32, #tpu.memory_space<vmem>>, vector<2x256xf32>,
    return
  }
  func.func @transform_0(%arg0: i32, %arg1: i32) -> (i32, i32) {
    %c0_i32 = arith.constant 0 : i32
    return %arg1, %arg0 : i32, i32
  }
  func.func @transform_1(%arg0: i32, %arg1: i32) -> (i32, i32) {
    %c0_i32 = arith.constant 0 : i32
    %c0_i32_0 = arith.constant 0 : i32
    return %c0_i32, %arg0 : i32, i32
  }
  func.func @transform_2(%arg0: i32, %arg1: i32) -> (i32, i32) {
    %c0_i32 = arith.constant 0 : i32
    return %arg1, %arg0 : i32, i32
  }
}

</mosaic_0001>

<bundles_post_ra>
// kernel: tpu_custom_call.1
= control target key start
LH: loop header
LB: loop body
LE: loop exit
PB: predicated region body
PF: predicated region fallthrough
CT: control target
= control target key end

     0   :  { %7 = vsyncpa [#allocation3], 0  ;;  %s177_s0 = inlined_call_operand.hbm [shape: f32[2,256], index: 0, kind: input, shape index: {}]   ;;  %s178_s1 = inlined_call_operand.hbm [shape: f32[1,256], index: 1, kind: input, shape index: {}]   ;;  %s179_s2 = inlined_call_operand.hbm [shape: f32[2,256], index: 2, kind: output, shape index: {}]  }
   0x1   :  { %8 = vsyncpa [#allocation6], 0 }
   0x2   :  { %9 = vsyncpa [#allocation4], 0  ;;  %s15_s11 = sshll.u32 %s177_s0, 4  ;;  %s150_s12 = smov [#allocation2]   ;;  %s16_s11 = int_to_ptr.hbm [resolvable:$true] %s15_s11 }
   0x3   :  { %s17_s13 = sshll.u32 %s150_s12, 4  ;;  %s26_s16 = sshll.u32 %s178_s1, 4  ;;  %s18_s13 = int_to_ptr.vmem [resolvable:$true] %s17_s13  ;;  %s27_s16 = int_to_ptr.hbm [resolvable:$true] %s26_s16 }
   0x4   :  { %20 = dma.hbm_to_vmem [thread:$0]  %s16_s11, 64, %s18_s13, [#allocation3]  }
   0x5   :  { %s151_s17 = smov [#allocation5]  }
   0x6   :  { %s28_s18 = sshll.u32 %s151_s17, 4  ;;  %s29_s18 = int_to_ptr.vmem [resolvable:$true] %s28_s18 }
   0x7   :  { %31 = dma.hbm_to_vmem [thread:$0]  %s27_s16, 32, %s29_s18, [#allocation6]  }
   0x8   :  { %144 = dma.done.wait [#allocation3], 64  }
   0x9   :  { %145 = vsyncadd [#allocation3], 4294967232 }
   0xa   :  { %146 = dma.done.wait [#allocation6], 32  }
   0xb   :  { %147 = vsyncadd [#allocation6], 4294967264  ;;  %v41_v0 = vld [vmem:[#allocation5] sm:$0x3]  ;;  %vm46_vm0 = vcmask 1041408   ;;  %s152_s0 = smov [#allocation7]  }
   0xc   :  { %v43_v1 = vperm.slane %v41_v0, 0  ;;  %v44_v2 = vperm.slane %v41_v0, 1  ;;  %v40_v3 = vld [vmem:[#allocation2] sm:$0xf]  ;;  %s56_s19 = sshll.u32 %s152_s0, 4  ;;  %s58_s21 = sshll.u32 %s179_s2, 4  ;;  %s57_s19 = int_to_ptr.vmem [resolvable:$true] %s56_s19  ;;  %s59_s21 = int_to_ptr.hbm [resolvable:$true] %s58_s21 }
   0xe   :  { %v45_v4 = vrot.slane %v44_v2, 6 }
  0x10   :  { %v47_v5 = vsel %vm46_vm0, %v43_v1, %v45_v4 }
  0x11   :  { %v49_v6 = vadd.f32 %v47_v5, %v40_v3 }
  0x13   :  { %50 = vst [vmem:[#allocation7] sm:$0xf] %v49_v6 }
  0x14   :  { %61 = dma.vmem_to_hbm [thread:$0]  %s57_s19, 64, %s59_s21, [#allocation4]  }
  0x15   :  { %148 = dma.done.wait [#allocation4], 64  }
  0x16   :  { %149 = vsyncadd [#allocation4], 4294967232 }
  0x17   :  { %66 = vsyncpa [#allocation3], 1 }
  0x18   :  { %67 = vsyncpa [#allocation6], 1 }
  0x19   :  { %68 = vsyncpa [#allocation4], 1 }

</bundles_post_ra>
